<compile_context>
chip_gen: v5e
topology: v5e:2x2
jax: 0.10.0
libtpu: 0.0.40
codegen_flags: <defaults>
</compile_context>

<pallas_src>
import functools

import jax
import jax.numpy as jnp
from jax import lax
from jax.experimental import pallas as pl
from jax.experimental.pallas import tpu as pltpu


def _fused_mha_kernel(x_ref, w_ref, o_ref, *, num_heads, head_size, approx_recip):
    """One grid step: Bt batch elements, all heads.

    x_ref: (Bt, T, C)      batch block
    w_ref: (C, 3*H*hs)     packed [C**-0.5 * Wq^T | Wk^T | Wv^T], VMEM-resident
    o_ref: (Bt, T, H*hs)   heads concatenated along the last (lane) dim
    """
    Bt, T, C = x_ref.shape
    H, hs = num_heads, head_size
    Hhs = H * hs

    # Fused QKV projection: one lane-dense MXU matmul, M = Bt*T, N = 3*H*hs.
    x2d = x_ref[...].reshape(Bt * T, C)
    qkv = jnp.dot(x2d, w_ref[...], preferred_element_type=jnp.float32)  # (Bt*T, 3*Hhs) f32
    # Keep subsequent MXU inputs in the compute dtype (bf16 on the low-precision path).
    qkv = qkv.astype(x_ref.dtype)

    # Causal mask shared across heads and batch elements.
    row = lax.broadcasted_iota(jnp.int32, (T, T), 0)
    col = lax.broadcasted_iota(jnp.int32, (T, T), 1)
    causal = (col <= row)[None]                          # (1, T, T)

    # Per-head causal attention. Static trip count (H is small, good for LLO
    # scheduling); each head's result is stored immediately into its lane slice
    # of o_ref, so no head's (T,T) scores / output stay live past its iteration
    # and there is no final concatenate.
    for h in range(H):
        q = qkv[:, h * hs:(h + 1) * hs].reshape(Bt, T, hs)
        k = qkv[:, Hhs + h * hs:Hhs + (h + 1) * hs].reshape(Bt, T, hs)
        v = qkv[:, 2 * Hhs + h * hs:2 * Hhs + (h + 1) * hs].reshape(Bt, T, hs)

        # scores = (C**-0.5 * q) @ k^T : scale already folded into Wq columns;
        # batched dot_general over the Bt batch dim, no materialized transpose.
        s = jnp.einsum("bqd,bkd->bqk", q, k,
                       preferred_element_type=jnp.float32)           # (Bt, T, T) f32
        s = jnp.where(causal, s, -jnp.inf)

        # Softmax in f32 on the VPU; the reciprocal runs on the EUP slot.
        m = jnp.max(s, axis=-1, keepdims=True)
        e = jnp.exp(s - m)
        denom = jnp.sum(e, axis=-1, keepdims=True)
        p = e * pl.reciprocal(denom, approx=approx_recip)

        out_h = jnp.einsum("bqk,bkd->bqd", p.astype(v.dtype), v,
                           preferred_element_type=jnp.float32)        # (Bt, T, hs) f32

        # torch.cat([head(x) for head in heads], dim=-1): head h owns lanes
        # [h*hs, (h+1)*hs) of the output block.
        o_ref[:, :, h * hs:(h + 1) * hs] = out_h.astype(o_ref.dtype)


def _pack_weights(wq, wk, wv, scale):
    """(H, hs, C) nn.Linear weights -> (C, 3*H*hs) packed [scale*Wq^T | Wk^T | Wv^T]."""
    H, hs, C = wq.shape

    def to_cols(w):  # (H, hs, C) -> (C, H*hs): (x @ cols)[:, h*hs:(h+1)*hs] == x @ w[h].T
        return jnp.transpose(w, (2, 0, 1)).reshape(C, H * hs)

    return jnp.concatenate([to_cols(wq) * scale, to_cols(wk), to_cols(wv)], axis=-1)


def _pick_batch_block(B, T, target_rows=256):
    """Largest divisor of B such that Bt*T <= ~target_rows (at least 1)."""
    bt = max(1, min(B, max(1, target_rows // max(T, 1))))
    while B % bt:
        bt -= 1
    return bt


def _weight_spec(C, N):
    # Constant block index across the whole grid -> the packed weight is DMA'd
    # once and stays VMEM-resident; request a single buffer for it.
    index_map = lambda b: (0, 0)
    try:
        return pl.BlockSpec((C, N), index_map, pipeline_mode=pl.Buffered(1))
    except Exception:  # older jax without pipeline_mode / Buffered
        return pl.BlockSpec((C, N), index_map)


def _vmem_limit_bytes(Bt, T, C, Hhs, in_itemsize, out_itemsize):
    x_blk = Bt * T * C * in_itemsize * 2            # double-buffered input block
    w_blk = C * 3 * Hhs * in_itemsize               # resident, single-buffered weight
    o_blk = Bt * T * Hhs * out_itemsize * 2         # double-buffered output block
    # rough in-kernel intermediates: f32 qkv + one head's f32 scores/probs/out
    interm = Bt * T * 3 * Hhs * 4 + 2 * Bt * T * T * 4 + Bt * T * Hhs * 4
    est = x_blk + w_blk + o_blk + interm
    return int(min(64 << 20, max(32 << 20, 2 * est)))   # headroom, capped for v7x


def multi_head_attention(x, wq, wk, wv, *, compute_dtype=None, batch_block=None):
    """x: (B, T, C); wq/wk/wv: (H, head_size, C) in nn.Linear (out, in) layout.

    Returns (B, T, H*head_size), matching torch.cat([head(x) ...], dim=-1).
    compute_dtype=jnp.bfloat16 feeds the MXU bf16 inputs (f32 accumulation,
    f32 softmax) -- valid on v5e / v6e / v7x alike.
    """
    B, T, C = x.shape
    H, hs, _ = wq.shape
    Hhs = H * hs

    # Fold the module's C**-0.5 (C = n_embd) score scale into the Wq columns.
    w_packed = _pack_weights(wq, wk, wv, jnp.float32(C) ** -0.5)

    if compute_dtype is not None:
        x_in = x.astype(compute_dtype)
        w_in = w_packed.astype(compute_dtype)
    else:
        x_in, w_in = x, w_packed

    Bt = batch_block or _pick_batch_block(B, T)

    kernel = functools.partial(
        _fused_mha_kernel,
        num_heads=H,
        head_size=hs,
        approx_recip=(jnp.dtype(x_in.dtype) == jnp.dtype(jnp.bfloat16)),
    )

    vmem_limit = _vmem_limit_bytes(
        Bt, T, C, Hhs, jnp.dtype(x_in.dtype).itemsize, jnp.dtype(x.dtype).itemsize)

    return pl.pallas_call(
        kernel,
        out_shape=jax.ShapeDtypeStruct((B, T, Hhs), x.dtype),
        grid_spec=pltpu.PrefetchScalarGridSpec(
            num_scalar_prefetch=0,
            grid=(B // Bt,),
            in_specs=[
                pl.BlockSpec((Bt, T, C), lambda b: (b, 0, 0)),
                _weight_spec(C, 3 * Hhs),
            ],
            out_specs=pl.BlockSpec((Bt, T, Hhs), lambda b: (b, 0, 0)),
        ),
        compiler_params=pltpu.CompilerParams(
            dimension_semantics=("parallel",),
            vmem_limit_bytes=vmem_limit,
        ),
    )(x_in, w_in)


def _reference(x, wq, wk, wv):
    # Pure-JAX reference mirroring the PyTorch forward exactly.
    B, T, C = x.shape
    row = jnp.arange(T)[:, None]
    col = jnp.arange(T)[None, :]
    outs = []
    for h in range(wq.shape[0]):
        q = x @ wq[h].T
        k = x @ wk[h].T
        v = x @ wv[h].T
        wei = (q @ jnp.swapaxes(k, -2, -1)) * (C ** -0.5)
        wei = jnp.where(col <= row, wei, -jnp.inf)
        wei = jax.nn.softmax(wei, axis=-1)
        outs.append(wei @ v)
    return jnp.concatenate(outs, axis=-1)


if __name__ == "__main__":
    # Small shapes consistent with the module.
    num_heads = 4
    head_size = 8
    n_embd = 32
    block_size = 8   # == T here (full causal block)
    B, T = 2, block_size

    key = jax.random.PRNGKey(0)
    kx, kq, kk, kv = jax.random.split(key, 4)

    x = jax.random.normal(kx, (B, T, n_embd), dtype=jnp.float32)
    # nn.Linear weight layout: (out_features, in_features).
    wq = jax.random.normal(kq, (num_heads, head_size, n_embd), dtype=jnp.float32) * 0.1
    wk = jax.random.normal(kk, (num_heads, head_size, n_embd), dtype=jnp.float32) * 0.1
    wv = jax.random.normal(kv, (num_heads, head_size, n_embd), dtype=jnp.float32) * 0.1

    ref = _reference(x, wq, wk, wv)

    # f32 path (scale folding / reciprocal reorder -> tiny rounding differences).
    out = multi_head_attention(x, wq, wk, wv)
    jax.block_until_ready(out)
    assert out.shape == (B, T, num_heads * head_size), out.shape
    assert jnp.allclose(out, ref, atol=1e-4, rtol=1e-4), "f32 mismatch vs reference"

    # bf16 MXU-input path (valid on v5e/v6e/v7x), f32 accumulation -> loose tolerance.
    out_bf16 = multi_head_attention(x, wq, wk, wv, compute_dtype=jnp.bfloat16)
    jax.block_until_ready(out_bf16)
    assert out_bf16.shape == (B, T, num_heads * head_size)
    assert jnp.allclose(out_bf16, ref, atol=5e-2, rtol=5e-2), "bf16 mismatch vs reference"

    print("KERNEL_OK")
</pallas_src>

<mosaic_0001>
module attributes {stable_mosaic.version = 11 : i64} {
  func.func @_fused_mha_kernel(%arg0: i32, %arg1: memref<2x8x32xf32, #tpu.memory_space<vmem>>, %arg2: memref<32x96xf32, #tpu.memory_space<vmem>>, %arg3: memref<2x8x32xf32, #tpu.memory_space<vmem>>) attributes {dimension_semantics = [#tpu.dimension_semantics<parallel>], iteration_bounds = array<i64: 1>, scalar_prefetch = 0 : i64, scratch_operands = 0 : i64, tpu.core_type = #tpu.core_type<tc>, window_params = [{transform_indices = @transform_0, window_bounds = array<i64: 2, 8, 32>}, {pipeline_mode = #tpu.pipeline_mode<synchronous>, transform_indices = @transform_1, window_bounds = array<i64: 32, 96>}, {transform_indices = @transform_2, window_bounds = array<i64: 2, 8, 32>}]} {
    %c0 = arith.constant 0 : index
    %c0_0 = arith.constant 0 : index
    %c0_1 = arith.constant 0 : index
    %0 = vector.load %arg1[%c0, %c0_0, %c0_1] : memref<2x8x32xf32, #tpu.memory_space<vmem>>, vector<2x8x32xf32>
    %1 = vector.shape_cast %0 : vector<2x8x32xf32> to vector<16x32xf32>
    %c0_2 = arith.constant 0 : index
    %c0_3 = arith.constant 0 : index
    %2 = vector.load %arg2[%c0_2, %c0_3] : memref<32x96xf32, #tpu.memory_space<vmem>>, vector<32x96xf32>
    %cst = arith.constant dense<0.000000e+00> : vector<16x96xf32>
    %3 = tpu.matmul %1, %2, %cst {dimension_numbers = #tpu.dot_dimension_numbers<[1], [0], [0], [1], [0, 0, 1, 1], [], []>} : vector<16x32xf32>, vector<32x96xf32>, vector<16x96xf32> -> vector<16x96xf32>
    %4 = tpu.iota {dimensions = array<i32: 0>} : vector<8x8xi32>
    %5 = tpu.iota {dimensions = array<i32: 1>} : vector<8x8xi32>
    %6 = arith.cmpi sle, %5, %4 : vector<8x8xi32>
    %7 = vector.shape_cast %6 : vector<8x8xi1> to vector<1x8x8xi1>
    %8 = vector.extract_strided_slice %3 {offsets = [0, 0], sizes = [16, 8], strides = [1, 1]} : vector<16x96xf32> to vector<16x8xf32>
    %9 = vector.shape_cast %8 : vector<16x8xf32> to vector<2x8x8xf32>
    %10 = vector.extract_strided_slice %3 {offsets = [0, 32], sizes = [16, 8], strides = [1, 1]} : vector<16x96xf32> to vector<16x8xf32>
    %11 = vector.shape_cast %10 : vector<16x8xf32> to vector<2x8x8xf32>
    %12 = vector.extract_strided_slice %3 {offsets = [0, 64], sizes = [16, 8], strides = [1, 1]} : vector<16x96xf32> to vector<16x8xf32>
    %13 = vector.shape_cast %12 : vector<16x8xf32> to vector<2x8x8xf32>
    "tpu.trace_start"() <{level = 10 : i32, message = "bqd,bkd->bqk"}> : () -> ()
    %cst_4 = arith.constant dense<0.000000e+00> : vector<2x8x8xf32>
    %14 = tpu.matmul %9, %11, %cst_4 {dimension_numbers = #tpu.dot_dimension_numbers<[2], [2], [1], [1], [0, 0, 0, 1, 1, 1], [0], [0]>} : vector<2x8x8xf32>, vector<2x8x8xf32>, vector<2x8x8xf32> -> vector<2x8x8xf32>
    %cst_5 = arith.constant 0xFF800000 : f32
    "tpu.trace_stop"() : () -> ()
    %15 = vector.shape_cast %7 : vector<1x8x8xi1> to vector<1x8x8xi1>
    %16 = vector.broadcast %15 : vector<1x8x8xi1> to vector<2x8x8xi1>
    %17 = vector.broadcast %cst_5 : f32 to vector<2x8x8xf32>
    %18 = arith.select %16, %14, %17 : vector<2x8x8xi1>, vector<2x8x8xf32>
    %cst_6 = arith.constant dense<0xFF800000> : vector<2x8xf32>
    %19 = vector.multi_reduction <maximumf>, %18, %cst_6 [2] : vector<2x8x8xf32> to vector<2x8xf32>
    %20 = vector.shape_cast %19 : vector<2x8xf32> to vector<2x8x1xf32>
    %21 = vector.broadcast %20 : vector<2x8x1xf32> to vector<2x8x8xf32>
    %22 = arith.subf %18, %21 : vector<2x8x8xf32>
    %23 = math.exp %22 : vector<2x8x8xf32>
    %cst_7 = arith.constant dense<0.000000e+00> : vector<2x8xf32>
    %24 = vector.multi_reduction <add>, %23, %cst_7 [2] : vector<2x8x8xf32> to vector<2x8xf32>
    %25 = vector.shape_cast %24 : vector<2x8xf32> to vector<2x8x1xf32>
    %26 = tpu.reciprocal %25 : vector<2x8x1xf32> -> vector<2x8x1xf32>
    %27 = vector.broadcast %26 : vector<2x8x1xf32> to vector<2x8x8xf32>
    %28 = arith.mulf %23, %27 : vector<2x8x8xf32>
    "tpu.trace_start"() <{level = 10 : i32, message = "bqk,bkd->bqd"}> : () -> ()
    %cst_8 = arith.constant dense<0.000000e+00> : vector<2x8x8xf32>
    %29 = tpu.matmul %28, %13, %cst_8 {dimension_numbers = #tpu.dot_dimension_numbers<[2], [1], [1], [2], [0, 0, 0, 1, 1, 2], [0], [0]>} : vector<2x8x8xf32>, vector<2x8x8xf32>, vector<2x8x8xf32> -> vector<2x8x8xf32>
    "tpu.trace_stop"() : () -> ()
    %c0_9 = arith.constant 0 : index
    %c0_10 = arith.constant 0 : index
    %c0_11 = arith.constant 0 : index
    %30 = vector.load %arg3[%c0_9, %c0_10, %c0_11] : memref<2x8x32xf32, #tpu.memory_space<vmem>>, vector<2x8x8xf32>
    tpu.vector_store %arg3[%c0_9, %c0_10, %c0_11], %29 {strides = array<i32>} : memref<2x8x32xf32, #tpu.memory_space<vmem>>, vector<2x8x8xf32>,
    %31 = vector.extract_strided_slice %3 {offsets = [0, 8], sizes = [16, 8], strides = [1, 1]} : vector<16x96xf32> to vector<16x8xf32>
    %32 = vector.shape_cast %31 : vector<16x8xf32> to vector<2x8x8xf32>
    %33 = vector.extract_strided_slice %3 {offsets = [0, 40], sizes = [16, 8], strides = [1, 1]} : vector<16x96xf32> to vector<16x8xf32>
    %34 = vector.shape_cast %33 : vector<16x8xf32> to vector<2x8x8xf32>
    %35 = vector.extract_strided_slice %3 {offsets = [0, 72], sizes = [16, 8], strides = [1, 1]} : vector<16x96xf32> to vector<16x8xf32>
    %36 = vector.shape_cast %35 : vector<16x8xf32> to vector<2x8x8xf32>
    "tpu.trace_start"() <{level = 10 : i32, message = "bqd,bkd->bqk"}> : () -> ()
    %cst_12 = arith.constant dense<0.000000e+00> : vector<2x8x8xf32>
    %37 = tpu.matmul %32, %34, %cst_12 {dimension_numbers = #tpu.dot_dimension_numbers<[2], [2], [1], [1], [0, 0, 0, 1, 1, 1], [0], [0]>} : vector<2x8x8xf32>, vector<2x8x8xf32>, vector<2x8x8xf32> -> vector<2x8x8xf32>
    %cst_13 = arith.constant 0xFF800000 : f32
    "tpu.trace_stop"() : () -> ()
    %38 = vector.shape_cast %7 : vector<1x8x8xi1> to vector<1x8x8xi1>
    %39 = vector.broadcast %38 : vector<1x8x8xi1> to vector<2x8x8xi1>
    %40 = vector.broadcast %cst_13 : f32 to vector<2x8x8xf32>
    %41 = arith.select %39, %37, %40 : vector<2x8x8xi1>, vector<2x8x8xf32>
    %cst_14 = arith.constant dense<0xFF800000> : vector<2x8xf32>
    %42 = vector.multi_reduction <maximumf>, %41, %cst_14 [2] : vector<2x8x8xf32> to vector<2x8xf32>
    %43 = vector.shape_cast %42 : vector<2x8xf32> to vector<2x8x1xf32>
    %44 = vector.broadcast %43 : vector<2x8x1xf32> to vector<2x8x8xf32>
    %45 = arith.subf %41, %44 : vector<2x8x8xf32>
    %46 = math.exp %45 : vector<2x8x8xf32>
    %cst_15 = arith.constant dense<0.000000e+00> : vector<2x8xf32>
    %47 = vector.multi_reduction <add>, %46, %cst_15 [2] : vector<2x8x8xf32> to vector<2x8xf32>
    %48 = vector.shape_cast %47 : vector<2x8xf32> to vector<2x8x1xf32>
    %49 = tpu.reciprocal %48 : vector<2x8x1xf32> -> vector<2x8x1xf32>
    %50 = vector.broadcast %49 : vector<2x8x1xf32> to vector<2x8x8xf32>
    %51 = arith.mulf %46, %50 : vector<2x8x8xf32>
    "tpu.trace_start"() <{level = 10 : i32, message = "bqk,bkd->bqd"}> : () -> ()
    %cst_16 = arith.constant dense<0.000000e+00> : vector<2x8x8xf32>
    %52 = tpu.matmul %51, %36, %cst_16 {dimension_numbers = #tpu.dot_dimension_numbers<[2], [1], [1], [2], [0, 0, 0, 1, 1, 2], [0], [0]>} : vector<2x8x8xf32>, vector<2x8x8xf32>, vector<2x8x8xf32> -> vector<2x8x8xf32>
    "tpu.trace_stop"() : () -> ()
    %c0_17 = arith.constant 0 : index
    %c0_18 = arith.constant 0 : index
    %c8 = arith.constant 8 : index
    %53 = vector.load %arg3[%c0_17, %c0_18, %c8] : memref<2x8x32xf32, #tpu.memory_space<vmem>>, vector<2x8x8xf32>
    tpu.vector_store %arg3[%c0_17, %c0_18, %c8], %52 {strides = array<i32>} : memref<2x8x32xf32, #tpu.memory_space<vmem>>, vector<2x8x8xf32>,
    %54 = vector.extract_strided_slice %3 {offsets = [0, 16], sizes = [16, 8], strides = [1, 1]} : vector<16x96xf32> to vector<16x8xf32>
    %55 = vector.shape_cast %54 : vector<16x8xf32> to vector<2x8x8xf32>
    %56 = vector.extract_strided_slice %3 {offsets = [0, 48], sizes = [16, 8], strides = [1, 1]} : vector<16x96xf32> to vector<16x8xf32>
    %57 = vector.shape_cast %56 : vector<16x8xf32> to vector<2x8x8xf32>
    %58 = vector.extract_strided_slice %3 {offsets = [0, 80], sizes = [16, 8], strides = [1, 1]} : vector<16x96xf32> to vector<16x8xf32>
    %59 = vector.shape_cast %58 : vector<16x8xf32> to vector<2x8x8xf32>
    "tpu.trace_start"() <{level = 10 : i32, message = "bqd,bkd->bqk"}> : () -> ()
    %cst_19 = arith.constant dense<0.000000e+00> : vector<2x8x8xf32>
    %60 = tpu.matmul %55, %57, %cst_19 {dimension_numbers = #tpu.dot_dimension_numbers<[2], [2], [1], [1], [0, 0, 0, 1, 1, 1], [0], [0]>} : vector<2x8x8xf32>, vector<2x8x8xf32>, vector<2x8x8xf32> -> vector<2x8x8xf32>
    %cst_20 = arith.constant 0xFF800000 : f32
    "tpu.trace_stop"() : () -> ()
    %61 = vector.shape_cast %7 : vector<1x8x8xi1> to vector<1x8x8xi1>
    %62 = vector.broadcast %61 : vector<1x8x8xi1> to vector<2x8x8xi1>
    %63 = vector.broadcast %cst_20 : f32 to vector<2x8x8xf32>
    %64 = arith.select %62, %60, %63 : vector<2x8x8xi1>, vector<2x8x8xf32>
    %cst_21 = arith.constant dense<0xFF800000> : vector<2x8xf32>
    %65 = vector.multi_reduction <maximumf>, %64, %cst_21 [2] : vector<2x8x8xf32> to vector<2x8xf32>
    %66 = vector.shape_cast %65 : vector<2x8xf32> to vector<2x8x1xf32>
    %67 = vector.broadcast %66 : vector<2x8x1xf32> to vector<2x8x8xf32>
    %68 = arith.subf %64, %67 : vector<2x8x8xf32>
    %69 = math.exp %68 : vector<2x8x8xf32>
    %cst_22 = arith.constant dense<0.000000e+00> : vector<2x8xf32>
    %70 = vector.multi_reduction <add>, %69, %cst_22 [2] : vector<2x8x8xf32> to vector<2x8xf32>
    %71 = vector.shape_cast %70 : vector<2x8xf32> to vector<2x8x1xf32>
    %72 = tpu.reciprocal %71 : vector<2x8x1xf32> -> vector<2x8x1xf32>
    %73 = vector.broadcast %72 : vector<2x8x1xf32> to vector<2x8x8xf32>
    %74 = arith.mulf %69, %73 : vector<2x8x8xf32>
    "tpu.trace_start"() <{level = 10 : i32, message = "bqk,bkd->bqd"}> : () -> ()
    %cst_23 = arith.constant dense<0.000000e+00> : vector<2x8x8xf32>
    %75 = tpu.matmul %74, %59, %cst_23 {dimension_numbers = #tpu.dot_dimension_numbers<[2], [1], [1], [2], [0, 0, 0, 1, 1, 2], [0], [0]>} : vector<2x8x8xf32>, vector<2x8x8xf32>, vector<2x8x8xf32> -> vector<2x8x8xf32>
    "tpu.trace_stop"() : () -> ()
    %c0_24 = arith.constant 0 : index
    %c0_25 = arith.constant 0 : index
    %c16 = arith.constant 16 : index
    %76 = vector.load %arg3[%c0_24, %c0_25, %c16] : memref<2x8x32xf32, #tpu.memory_space<vmem>>, vector<2x8x8xf32>
    tpu.vector_store %arg3[%c0_24, %c0_25, %c16], %75 {strides = array<i32>} : memref<2x8x32xf32, #tpu.memory_space<vmem>>, vector<2x8x8xf32>,
    %77 = vector.extract_strided_slice %3 {offsets = [0, 24], sizes = [16, 8], strides = [1, 1]} : vector<16x96xf32> to vector<16x8xf32>
    %78 = vector.shape_cast %77 : vector<16x8xf32> to vector<2x8x8xf32>
    %79 = vector.extract_strided_slice %3 {offsets = [0, 56], sizes = [16, 8], strides = [1, 1]} : vector<16x96xf32> to vector<16x8xf32>
    %80 = vector.shape_cast %79 : vector<16x8xf32> to vector<2x8x8xf32>
    %81 = vector.extract_strided_slice %3 {offsets = [0, 88], sizes = [16, 8], strides = [1, 1]} : vector<16x96xf32> to vector<16x8xf32>
    %82 = vector.shape_cast %81 : vector<16x8xf32> to vector<2x8x8xf32>
    "tpu.trace_start"() <{level = 10 : i32, message = "bqd,bkd->bqk"}> : () -> ()
    %cst_26 = arith.constant dense<0.000000e+00> : vector<2x8x8xf32>
    %83 = tpu.matmul %78, %80, %cst_26 {dimension_numbers = #tpu.dot_dimension_numbers<[2], [2], [1], [1], [0, 0, 0, 1, 1, 1], [0], [0]>} : vector<2x8x8xf32>, vector<2x8x8xf32>, vector<2x8x8xf32> -> vector<2x8x8xf32>
    %cst_27 = arith.constant 0xFF800000 : f32
    "tpu.trace_stop"() : () -> ()
    %84 = vector.shape_cast %7 : vector<1x8x8xi1> to vector<1x8x8xi1>
    %85 = vector.broadcast %84 : vector<1x8x8xi1> to vector<2x8x8xi1>
    %86 = vector.broadcast %cst_27 : f32 to vector<2x8x8xf32>
    %87 = arith.select %85, %83, %86 : vector<2x8x8xi1>, vector<2x8x8xf32>
    %cst_28 = arith.constant dense<0xFF800000> : vector<2x8xf32>
    %88 = vector.multi_reduction <maximumf>, %87, %cst_28 [2] : vector<2x8x8xf32> to vector<2x8xf32>
    %89 = vector.shape_cast %88 : vector<2x8xf32> to vector<2x8x1xf32>
    %90 = vector.broadcast %89 : vector<2x8x1xf32> to vector<2x8x8xf32>
    %91 = arith.subf %87, %90 : vector<2x8x8xf32>
    %92 = math.exp %91 : vector<2x8x8xf32>
    %cst_29 = arith.constant dense<0.000000e+00> : vector<2x8xf32>
    %93 = vector.multi_reduction <add>, %92, %cst_29 [2] : vector<2x8x8xf32> to vector<2x8xf32>
    %94 = vector.shape_cast %93 : vector<2x8xf32> to vector<2x8x1xf32>
    %95 = tpu.reciprocal %94 : vector<2x8x1xf32> -> vector<2x8x1xf32>
    %96 = vector.broadcast %95 : vector<2x8x1xf32> to vector<2x8x8xf32>
    %97 = arith.mulf %92, %96 : vector<2x8x8xf32>
    "tpu.trace_start"() <{level = 10 : i32, message = "bqk,bkd->bqd"}> : () -> ()
    %cst_30 = arith.constant dense<0.000000e+00> : vector<2x8x8xf32>
    %98 = tpu.matmul %97, %82, %cst_30 {dimension_numbers = #tpu.dot_dimension_numbers<[2], [1], [1], [2], [0, 0, 0, 1, 1, 2], [0], [0]>} : vector<2x8x8xf32>, vector<2x8x8xf32>, vector<2x8x8xf32> -> vector<2x8x8xf32>
    "tpu.trace_stop"() : () -> ()
    %c0_31 = arith.constant 0 : index
    %c0_32 = arith.constant 0 : index
    %c24 = arith.constant 24 : index
    %99 = vector.load %arg3[%c0_31, %c0_32, %c24] : memref<2x8x32xf32, #tpu.memory_space<vmem>>, vector<2x8x8xf32>
    tpu.vector_store %arg3[%c0_31, %c0_32, %c24], %98 {strides = array<i32>} : memref<2x8x32xf32, #tpu.memory_space<vmem>>, vector<2x8x8xf32>,
    return
  }
  func.func @transform_0(%arg0: i32) -> (i32, i32, i32) {
    %c0_i32 = arith.constant 0 : i32
    %c0_i32_0 = arith.constant 0 : i32
    %c0_i32_1 = arith.constant 0 : i32
    return %arg0, %c0_i32, %c0_i32_0 : i32, i32, i32
  }
  func.func @transform_1(%arg0: i32) -> (i32, i32) {
    %c0_i32 = arith.constant 0 : i32
    %c0_i32_0 = arith.constant 0 : i32
    %c0_i32_1 = arith.constant 0 : i32
    return %c0_i32, %c0_i32_0 : i32, i32
  }
  func.func @transform_2(%arg0: i32) -> (i32, i32, i32) {
    %c0_i32 = arith.constant 0 : i32
    %c0_i32_0 = arith.constant 0 : i32
    %c0_i32_1 = arith.constant 0 : i32
    return %arg0, %c0_i32, %c0_i32_0 : i32, i32, i32
  }
}

</mosaic_0001>

<bundles_post_ra>
// kernel: tpu_custom_call.1
= control target key start
LH: loop header
LB: loop body
LE: loop exit
PB: predicated region body
PF: predicated region fallthrough
CT: control target
= control target key end

     0   :  { %7 = vsyncpa [#allocation3], 0  ;;  %s1125_s0 = inlined_call_operand.hbm [shape: f32[2,8,32], index: 0, kind: input, shape index: {}]   ;;  %s1126_s1 = inlined_call_operand.hbm [shape: f32[32,96], index: 1, kind: input, shape index: {}]   ;;  %s1127_s2 = inlined_call_operand.hbm [shape: f32[2,8,32], index: 2, kind: output, shape index: {}]  }
   0x1   :  { %8 = vsyncpa [#allocation6], 0 }
   0x2   :  { %9 = vsyncpa [#allocation4], 0  ;;  %s14_s11 = sshll.u32 %s1125_s0, 4  ;;  %s937_s12 = smov [#allocation2]   ;;  %s15_s11 = int_to_ptr.hbm [resolvable:$true] %s14_s11 }
   0x3   :  { %s16_s13 = sshll.u32 %s937_s12, 4  ;;  %s27_s16 = sshll.u32 %s1126_s1, 4  ;;  %s17_s13 = int_to_ptr.vmem [resolvable:$true] %s16_s13  ;;  %s28_s16 = int_to_ptr.hbm [resolvable:$true] %s27_s16 }
   0x4   :  { %s938_s17 = smov 128   ;;  %s939_s18 = smov 8  }
   0x5   :  { %22 = dma.hbm_to_vmem [thread:$0]  %s15_s11, 256, %s17_s13, [#allocation3], %s938_s17, %s938_s17, %s939_s18  }
   0x6   :  { %s940_s19 = smov [#allocation5]  }
   0x7   :  { %s29_s20 = sshll.u32 %s940_s19, 4  ;;  %s30_s20 = int_to_ptr.vmem [resolvable:$true] %s29_s20 }
   0x8   :  { %35 = dma.hbm_to_vmem [thread:$0]  %s28_s16, 512, %s30_s20, [#allocation6], %s938_s17, %s938_s17, %s939_s18  }
   0x9   :  { %931 = dma.done.wait [#allocation3], 256  }
   0xa   :  { %932 = vsyncadd [#allocation3], 4294967040 }
   0xb   :  { %933 = dma.done.wait [#allocation6], 512  }
   0xc   :  { %934 = vsyncadd [#allocation6], 4294966784  ;;  %v49_v0 = vld [vmem:[#allocation5 + $0x18] sm:$0xff]  ;;  %v48_v1 = vld [vmem:[#allocation5 + $0x10] sm:$0xff]  ;;  %vm50_vm0 = vcmask 261120   ;;  %s941_s0 = smov 88   ;;  %v80_v22 = vlaneseq }
   0xd   :  { %69 = vmatpush.msra.mxu0 %v49_v0  ;;  %v47_v2 = vld [vmem:[#allocation5 + $0x8] sm:$0xff]  ;;  %v46_v3 = vld [vmem:[#allocation5] sm:$0xff]  ;;  %v44_v4 = vld [vmem:[#allocation2] sm:$0xff]  ;;  %s942_s1 = smov 96   ;;  %s943_s21 = smov 80   ;;  %vm88_vm1 = vcmask 64512  }
   0xe   :  { %v45_v5 = vld [vmem:[#allocation2 + $0x8] sm:$0xff]  ;;  %s944_s22 = smov 72   ;;  %s945_s23 = smov 120   ;;  %v81_v23 = vshrl.u32 %v80_v22, 7  ;;  %v83_v24 = vand.u32 127, %v80_v22 }
   0xf   :  { %70 = vmatpush.msra.mxu0 %v48_v1  ;;  %s946_s24 = smov 112   ;;  %s947_s25 = smov 104  }
  0x10   :  { %vm1018_vm2 = vcmp.le.s32.totalorder %v83_v24, %v81_v23  ;;  %s948_s26 = smov 56   ;;  %s949_s27 = smov 64  }
  0x11   :  { %71 = vmatpush.msra.mxu0 %v47_v2  ;;  %s950_s28 = smov 48   ;;  %s951_s29 = smov 40  }
  0x12   :  { %s952_s30 = smov 16   ;;  %s953_s3 = smov 24  }
  0x13   :  { %72 = vmatpush.msra.mxu0 %v46_v3  ;;  %s954_s4 = smov [#allocation7]   ;;  %s759_s8 = sshll.u32 %s1127_s2, 4  ;;  %s760_s8 = int_to_ptr.hbm [resolvable:$true] %s759_s8 }
  0x14   :  { %773 = vmatmul.msk.f32.vlgmr.msra.gmra.mxu0 %vm50_vm0, %v44_v4  ;;  %s757_s5 = sshll.u32 %s954_s4, 4  ;;  %s758_s5 = int_to_ptr.vmem [resolvable:$true] %s757_s5 }
  0x1c   :  { %774 = vmatmul.msk.f32.gmra.mxu0 %vm50_vm0, %v45_v5 }
  0x91   :  { %v982_v6 = vpop.f32.mrf.mxu0 }
  0x92   :  { %248 = vrot.lane.b32.xlu2 %v982_v6, %s941_s0  ;;  %86 = vrot.lane.b32.xlu0 %v982_v6, %s942_s1 }
  0x99   :  { %v986_v7 = vpop.f32.mrf.mxu0 }
  0x9a   :  { %417 = vrot.lane.b32.xlu2 %v982_v6, %s943_s21  ;;  %276 = vrot.lane.b32.xlu1 %v986_v7, %s941_s0  ;;  %v822_v50 = vpack.i.bf16 %v986_v7, %v982_v6 }
  0x9b   :  { %114 = vrot.lane.b32.xlu0 %v986_v7, %s942_s1 }
  0xa2   :  { %586 = vrot.lane.b32.xlu2 %v982_v6, %s944_s22  ;;  %274 = vrot.lane.b32.xlu1 %v986_v7, %s945_s23 }
  0xa3   :  { %246 = vrot.lane.b32.xlu0 %v982_v6, %s945_s23 }
  0xaa   :  { %443 = vrot.lane.b32.xlu2 %v986_v7, %s946_s24  ;;  %415 = vrot.lane.b32.xlu1 %v982_v6, %s946_s24 }
  0xab   :  { %584 = vrot.lane.b32.xlu0 %v982_v6, %s947_s25 }
  0xb2   :  { %445 = vrot.lane.b32.xlu1 %v986_v7, %s943_s21 }
  0xb3   :  { %614 = vrot.lane.b32.xlu0 %v986_v7, %s944_s22 }
  0xba   :  { %612 = vrot.lane.b32.xlu1 %v986_v7, %s947_s25 }
  0xec   :  { %v249_v9 = vpop.permute.xlu2 %248 }
  0xf4   :  { %v418_v12 = vpop.permute.xlu2 %417 }
  0xfc   :  { %v587_v15 = vpop.permute.xlu2 %586 }
 0x104   :  { %v87_v8 = vpop.permute.xlu0 %86  ;;  %v444_v20 = vpop.permute.xlu2 %443 }
 0x105   :  { %775 = vmatpush.xpose.msk.msra.mxu1 %vm88_vm1, %v87_v8 }
 0x108   :  { %776 = vmatmul.msk.f32.vlgmr.msra.gmra.mxu1 %vm88_vm1, %v982_v6 }
 0x109   :  { %781 = vmatpush.xpose.msk.msrb.mxu1 %vm88_vm1, %v249_v9 }
 0x10c   :  { %v277_v10 = vpop.permute.xlu1 %276 }
 0x10d   :  { %v115_v11 = vpop.permute.xlu0 %114 }
 0x10e   :  { %777 = vmatpush.xpose.msk.msra.mxu2 %vm88_vm1, %v115_v11 }
 0x111   :  { %778 = vmatmul.msk.f32.vlgmr.msra.gmra.mxu2 %vm88_vm1, %v986_v7 }
 0x112   :  { %783 = vmatpush.xpose.msk.msrb.mxu2 %vm88_vm1, %v277_v10 }
 0x114   :  { %v275_v13 = vpop.permute.xlu1 %274 }
 0x115   :  { %v247_v14 = vpop.permute.xlu0 %246 }
 0x116   :  { %787 = vmatpush.xpose.msk.msra.mxu2 %vm88_vm1, %v418_v12  ;;  %782 = vmatmul.msk.f32.vlgmr.msrb.gmra.mxu1 %vm88_vm1, %v247_v14 }
 0x119   :  { %784 = vmatmul.msk.f32.vlgmr.msrb.gmra.mxu2 %vm88_vm1, %v275_v13 }
 0x11a   :  { %793 = vmatpush.xpose.msk.msrb.mxu2 %vm88_vm1, %v587_v15 }
 0x11c   :  { %v416_v16 = vpop.permute.xlu1 %415 }
 0x11d   :  { %v585_v17 = vpop.permute.xlu0 %584 }
 0x121   :  { %788 = vmatmul.msk.f32.vlgmr.msra.gmra.mxu2 %vm88_vm1, %v416_v16 }
 0x124   :  { %v446_v18 = vpop.permute.xlu1 %445 }
 0x125   :  { %v615_v19 = vpop.permute.xlu0 %614  ;;  %789 = vmatpush.xpose.msk.msrb.mxu0 %vm88_vm1, %v446_v18 }
 0x128   :  { %790 = vmatmul.msk.f32.vlgmr.msrb.gmra.mxu0 %vm88_vm1, %v444_v20 }
 0x129   :  { %795 = vmatpush.xpose.msk.msra.mxu0 %vm88_vm1, %v615_v19  ;;  %794 = vmatmul.msk.f32.vlgmr.msrb.gmra.mxu2 %vm88_vm1, %v585_v17 }
 0x12c   :  { %v613_v21 = vpop.permute.xlu1 %612 }
 0x130   :  { %796 = vmatmul.msk.f32.vlgmr.msra.gmra.mxu0 %vm88_vm1, %v613_v21 }
 0x185   :  { %v110_v26 = vpop.f32.mrf.mxu1 }
 0x186   :  { %v142_v27 = vsel %vm1018_vm2, %v110_v26, -inf }
 0x187   :  { %v144_v28 = vsel %vm88_vm1, %v142_v27, -inf }
 0x188   :  { %145 = vmax.xlane.f32.xlu2 %v144_v28 }
 0x193   :  { %v271_v29 = vpop.f32.mrf.mxu1 }
 0x194   :  { %v302_v30 = vsel %vm1018_vm2, %v271_v29, -inf  ;;  %v137_v31 = vpop.f32.mrf.mxu2 }
 0x195   :  { %v143_v32 = vsel %vm1018_vm2, %v137_v31, -inf  ;;  %v304_v33 = vsel %vm88_vm1, %v302_v30, -inf }
 0x196   :  { %305 = vmax.xlane.f32.xlu1 %v304_v33  ;;  %v147_v34 = vsel %vm88_vm1, %v143_v32, -inf }
 0x197   :  { %148 = vmax.xlane.f32.xlu0 %v147_v34 }
 0x19c   :  { %v299_v35 = vpop.f32.mrf.mxu2 }
 0x19d   :  { %v1045_v46 = vsel %vm1018_vm2, %v299_v35, -inf }
 0x19e   :  { %v307_v47 = vsel %vm88_vm1, %v1045_v46, -inf }
 0x1a4   :  { %v440_v36 = vpop.f32.mrf.mxu2 }
 0x1a5   :  { %v468_v37 = vpop.f32.mrf.mxu0  ;;  %v471_v48 = vsel %vm1018_vm2, %v440_v36, -inf }
 0x1a6   :  { %v472_v38 = vsel %vm1018_vm2, %v468_v37, -inf  ;;  %v473_v49 = vsel %vm88_vm1, %v471_v48, -inf }
 0x1a7   :  { %v476_v39 = vsel %vm88_vm1, %v472_v38, -inf }
 0x1a8   :  { %477 = vmax.xlane.f32.xlu0 %v476_v39 }
 0x1ac   :  { %v609_v40 = vpop.f32.mrf.mxu2 }
 0x1ad   :  { %v1036_v41 = vsel %vm1018_vm2, %v609_v40, -inf  ;;  %v637_v42 = vpop.f32.mrf.mxu0 }
 0x1ae   :  { %v641_v43 = vsel %vm1018_vm2, %v637_v42, -inf  ;;  %v642_v44 = vsel %vm88_vm1, %v1036_v41, -inf }
 0x1af   :  { %643 = vmax.xlane.f32.xlu1 %v642_v44  ;;  %v645_v45 = vsel %vm88_vm1, %v641_v43, -inf }
 0x1b0   :  { %646 = vmax.xlane.f32.xlu2 %v645_v45 }
 0x1b8   :  { %308 = vmax.xlane.f32.xlu2 %v307_v47 }
 0x1c0   :  { %474 = vmax.xlane.f32.xlu2 %v473_v49 }
 0x1c8   :  { %823 = vrot.lane.b32.xlu1 %v822_v50, %s948_s26 }
 0x1fb   :  { %v146_v51 = vpop.xlane.xlu2 %145 }
 0x1fc   :  { %v150_v52 = vsub.f32 %v142_v27, %v146_v51 }
 0x1fe   :  { %v152_v53 = vmul.f32 1.442695, %v150_v52 }
 0x200   :  { %827 = vpow2.f32 %v152_v53 }
 0x206   :  { %v1054_v54 = vpop.eup %827 }
 0x207   :  { %v156_v55 = vsel %vm88_vm1, %v1054_v54, 0.0 }
 0x208   :  { %157 = vadd.xlane.f32.xlu0 %v156_v55 }
 0x209   :  { %v306_v56 = vpop.xlane.xlu1 %305 }
 0x20a   :  { %v310_v57 = vsub.f32 %v302_v30, %v306_v56  ;;  %v149_v59 = vpop.xlane.xlu0 %148 }
 0x20b   :  { %v151_v0 = vsub.f32 %v143_v32, %v149_v59 }
 0x20c   :  { %v312_v58 = vmul.f32 1.442695, %v310_v57 }
 0x20d   :  { %v154_v2 = vmul.f32 1.442695, %v151_v0 }
 0x20e   :  { %829 = vpow2.f32 %v312_v58 }
 0x214   :  { %v1058_v60 = vpop.eup %829 }
 0x215   :  { %v316_v61 = vsel %vm88_vm1, %v1058_v60, 0.0 }
 0x216   :  { %317 = vadd.xlane.f32.xlu2 %v316_v61 }
 0x21b   :  { %v478_v62 = vpop.xlane.xlu0 %477 }
 0x21c   :  { %v480_v63 = vsub.f32 %v472_v38, %v478_v62  ;;  %818 = vrot.lane.b32.xlu0 %v822_v50, %s949_s27 }
 0x21e   :  { %v483_v1 = vmul.f32 1.442695, %v480_v63 }
 0x220   :  { %831 = vpow2.f32 %v483_v1 }
 0x221   :  { %833 = vpow2.f32 %v154_v2 }
 0x222   :  { %v644_v10 = vpop.xlane.xlu1 %643 }
 0x223   :  { %v647_v8 = vpop.xlane.xlu2 %646  ;;  %v648_v21 = vsub.f32 %v1036_v41, %v644_v10 }
 0x224   :  { %v649_v11 = vsub.f32 %v641_v43, %v647_v8 }
 0x225   :  { %v650_v22 = vmul.f32 1.442695, %v648_v21 }
 0x226   :  { %v1062_v3 = vpop.eup %831  ;;  %v652_v12 = vmul.f32 1.442695, %v649_v11 }
 0x227   :  { %v488_v4 = vsel %vm88_vm1, %v1062_v3, 0.0  ;;  %v1066_v5 = vpop.eup %833 }
 0x228   :  { %489 = vadd.xlane.f32.xlu1 %v488_v4  ;;  %v159_v9 = vsel %vm88_vm1, %v1066_v5, 0.0  ;;  %835 = vpow2.f32 %v652_v12 }
 0x22b   :  { %v309_v13 = vpop.xlane.xlu2 %308 }
 0x22c   :  { %v311_v27 = vsub.f32 %v1045_v46, %v309_v13 }
 0x22e   :  { %521 = vrot.lane.b32.xlu2 %v982_v6, %s950_s28  ;;  %v1071_v16 = vpop.eup %835  ;;  %v314_v28 = vmul.f32 1.442695, %v311_v27 }
 0x22f   :  { %v657_v19 = vsel %vm88_vm1, %v1071_v16, 0.0 }
 0x230   :  { %160 = vadd.xlane.f32.xlu1 %v159_v9 }
 0x233   :  { %v475_v17 = vpop.xlane.xlu2 %474 }
 0x234   :  { %v479_v18 = vsub.f32 %v471_v48, %v475_v17 }
 0x236   :  { %v481_v20 = vmul.f32 1.442695, %v479_v18 }
 0x238   :  { %837 = vpow2.f32 %v481_v20 }
 0x239   :  { %839 = vpow2.f32 %v650_v22 }
 0x23a   :  { %v824_v14 = vpop.permute.xlu1 %823  ;;  %841 = vpow2.f32 %v314_v28 }
 0x23b   :  { %v826_v15 = vunpack.i.h.bf16 %v824_v14  ;;  %v825_v45 = vunpack.i.l.bf16 %v824_v14 }
 0x23d   :  { %399 = vmatpush.msra.mxu1 %v826_v15 }
 0x23e   :  { %v1077_v23 = vpop.eup %837 }
 0x23f   :  { %v485_v24 = vsel %vm88_vm1, %v1077_v23, 0.0  ;;  %v1081_v25 = vpop.eup %839 }
 0x240   :  { %v654_v26 = vsel %vm88_vm1, %v1081_v25, 0.0  ;;  %v1086_v29 = vpop.eup %841 }
 0x241   :  { %v319_v30 = vsel %vm88_vm1, %v1086_v29, 0.0 }
 0x246   :  { %658 = vadd.xlane.f32.xlu0 %v657_v19 }
 0x249   :  { %547 = vrot.lane.b32.xlu1 %v986_v7, %s950_s28 }
 0x257   :  { %486 = vadd.xlane.f32.xlu2 %v485_v24 }
 0x25f   :  { %655 = vadd.xlane.f32.xlu2 %v654_v26 }
 0x273   :  { %320 = vadd.xlane.f32.xlu1 %v319_v30 }
 0x277   :  { %690 = vrot.lane.b32.xlu2 %v982_v6, %s951_s29 }
 0x27b   :  { %v158_v31 = vpop.xlane.xlu0 %157 }
 0x27c   :  { %843 = vrcp.f32 %v158_v31  ;;  %v173_v36 = vand.u32 2147483648, %v158_v31  ;;  %v171_v37 = vand.u32 2147483647, %v158_v31  ;;  %vm167_vm4 = vweird.f32 %v158_v31 }
 0x27e   :  { %v174_v39 = vor.u32 1.1754944e-38, %v173_v36  ;;  %vm172_vm6 = vcmp.eq.f32.partialorder %v171_v37, 8.507059e+37 }
 0x282   :  { %v844_v32 = vpop.eup %843 }
 0x283   :  { %v163_v33 = vmul.f32 %v844_v32, %v158_v31  ;;  %vm168_vm3 = vweird.f32 %v844_v32 }
 0x284   :  { %vm169_vm5 = vmor %vm167_vm4, %vm168_vm3 }
 0x285   :  { %v164_v34 = vsub.f32 1.0, %v163_v33 }
 0x287   :  { %v165_v35 = vmul.f32 %v844_v32, %v164_v34 }
 0x289   :  { %v166_v38 = vadd.f32 %v844_v32, %v165_v35  ;;  %v318_v46 = vpop.xlane.xlu2 %317 }
 0x28a   :  { %845 = vrcp.f32 %v318_v46  ;;  %v333_v63 = vand.u32 2147483648, %v318_v46  ;;  %vm327_vm12 = vweird.f32 %v318_v46  ;;  %v331_v1 = vand.u32 2147483647, %v318_v46 }
 0x28b   :  { %v170_v40 = vsel %vm169_vm5, %v844_v32, %v166_v38 }
 0x28c   :  { %716 = vrot.lane.b32.xlu1 %v986_v7, %s951_s29  ;;  %v175_v41 = vsel %vm172_vm6, %v174_v39, %v170_v40  ;;  %v334_v9 = vor.u32 1.1754944e-38, %v333_v63  ;;  %vm332_vm14 = vcmp.eq.f32.partialorder %v331_v1, 8.507059e+37 }
 0x28d   :  { %v190_v44 = vmul.f32 %v1054_v54, %v175_v41 }
 0x28e   :  { %v819_v42 = vpop.permute.xlu0 %818 }
 0x28f   :  { %v820_v6 = vunpack.i.l.bf16 %v819_v42  ;;  %v821_v43 = vunpack.i.h.bf16 %v819_v42 }
 0x290   :  { %v846_v49 = vpop.eup %845 }
 0x291   :  { %213 = vmatpush.msra.mxu3 %v820_v6  ;;  %v323_v7 = vmul.f32 %v846_v49, %v318_v46  ;;  %vm328_vm10 = vweird.f32 %v846_v49  ;;  %v522_v8 = vpop.permute.xlu2 %521 }
 0x292   :  { %779 = vmatmul.msk.f32.vlgmr.msra.gmra.mxu3 %vm88_vm1, %v190_v44  ;;  %vm329_vm13 = vmor %vm327_vm12, %vm328_vm10 }
 0x293   :  { %239 = vmatpush.msrb.mxu3 %v821_v43  ;;  %v324_v51 = vsub.f32 1.0, %v323_v7 }
 0x295   :  { %373 = vmatpush.msra.mxu3 %v825_v45  ;;  %v325_v54 = vmul.f32 %v846_v49, %v324_v51 }
 0x297   :  { %v326_v61 = vadd.f32 %v846_v49, %v325_v54 }
 0x299   :  { %v330_v4 = vsel %vm329_vm13, %v846_v49, %v326_v61 }
 0x29a   :  { %v335_v10 = vsel %vm332_vm14, %v334_v9, %v330_v4 }
 0x29b   :  { %v1094_v47 = vpop.xlane.xlu1 %489  ;;  %v350_v12 = vmul.f32 %v1058_v60, %v335_v10 }
 0x29c   :  { %vm510_vm13 = vweird.f32 %v1094_v47 }
 0x2a3   :  { %v161_v48 = vpop.xlane.xlu1 %160 }
 0x2a4   :  { %847 = vrcp.f32 %v161_v48  ;;  %v187_v55 = vand.u32 2147483648, %v161_v48  ;;  %v185_v57 = vand.u32 2147483647, %v161_v48  ;;  %vm181_vm8 = vweird.f32 %v161_v48 }
 0x2a6   :  { %v188_v59 = vor.u32 1.1754944e-38, %v187_v55  ;;  %vm186_vm11 = vcmp.eq.f32.partialorder %v185_v57, 8.507059e+37 }
 0x2aa   :  { %v848_v50 = vpop.eup %847 }
 0x2ab   :  { %v177_v52 = vmul.f32 %v848_v50, %v161_v48  ;;  %vm182_vm7 = vweird.f32 %v848_v50 }
 0x2ac   :  { %vm183_vm9 = vmor %vm181_vm8, %vm182_vm7 }
 0x2ad   :  { %v178_v53 = vsub.f32 1.0, %v177_v52 }
 0x2af   :  { %v179_v56 = vmul.f32 %v848_v50, %v178_v53 }
 0x2b1   :  { %v180_v58 = vadd.f32 %v848_v50, %v179_v56  ;;  %v516_v56 = vand.u32 2147483648, %v1094_v47 }
 0x2b3   :  { %v184_v62 = vsel %vm183_vm9, %v848_v50, %v180_v58  ;;  %v514_v58 = vand.u32 2147483647, %v1094_v47  ;;  %v517_v63 = vor.u32 1.1754944e-38, %v516_v56 }
 0x2b4   :  { %v189_v0 = vsel %vm186_vm11, %v188_v59, %v184_v62 }
 0x2b5   :  { %v191_v2 = vmul.f32 %v1066_v5, %v189_v0 }
 0x2b7   :  { %780 = vmatmul.msk.f32.vlgmr.msrb.gmra.mxu3 %vm88_vm1, %v191_v2 }
 0x2b8   :  { %542 = vmatpush.msrb.mxu3 %v522_v8 }
 0x2b9   :  { %v659_v41 = vpop.xlane.xlu0 %658 }
 0x2ba   :  { %v685_v4 = vand.u32 2147483648, %v659_v41  ;;  %v683_v8 = vand.u32 2147483647, %v659_v41 }
 0x2bb   :  { %v548_v11 = vpop.permute.xlu1 %547 }
 0x2bc   :  { %568 = vmatpush.msrb.mxu1 %v548_v11 }
 0x2bf   :  { %785 = vmatmul.msk.f32.vlgmr.msra.gmra.mxu3 %vm88_vm1, %v350_v12 }
 0x2ca   :  { %v487_v13 = vpop.xlane.xlu2 %486 }
 0x2cb   :  { %849 = vrcp.f32 %v487_v13  ;;  %v502_v18 = vand.u32 2147483648, %v487_v13  ;;  %v500_v20 = vand.u32 2147483647, %v487_v13  ;;  %vm496_vm0 = vweird.f32 %v487_v13 }
 0x2cd   :  { %v503_v24 = vor.u32 1.1754944e-38, %v502_v18  ;;  %vm501_vm3 = vcmp.eq.f32.partialorder %v500_v20, 8.507059e+37 }
 0x2d1   :  { %v850_v14 = vpop.eup %849 }
 0x2d2   :  { %v492_v15 = vmul.f32 %v850_v14, %v487_v13  ;;  %v656_v5 = vpop.xlane.xlu2 %655  ;;  %vm497_vm15 = vweird.f32 %v850_v14 }
 0x2d3   :  { %851 = vrcp.f32 %v656_v5  ;;  %vm498_vm2 = vmor %vm496_vm0, %vm497_vm15  ;;  %v671_v32 = vand.u32 2147483648, %v656_v5  ;;  %v669_v34 = vand.u32 2147483647, %v656_v5  ;;  %vm665_vm5 = vweird.f32 %v656_v5 }
 0x2d4   :  { %v493_v17 = vsub.f32 1.0, %v492_v15  ;;  %853 = vrcp.f32 %v1094_v47  ;;  %vm515_vm15 = vcmp.eq.f32.partialorder %v514_v58, 8.507059e+37 }
 0x2d5   :  { %v672_v36 = vor.u32 1.1754944e-38, %v671_v32  ;;  %vm670_vm7 = vcmp.eq.f32.partialorder %v669_v34, 8.507059e+37 }
 0x2d6   :  { %v494_v19 = vmul.f32 %v850_v14, %v493_v17 }
 0x2d8   :  { %v495_v21 = vadd.f32 %v850_v14, %v494_v19 }
 0x2d9   :  { %v852_v22 = vpop.eup %851 }
 0x2da   :  { %v499_v26 = vsel %vm498_vm2, %v850_v14, %v495_v21  ;;  %v661_v60 = vmul.f32 %v852_v22, %v656_v5  ;;  %v691_v27 = vpop.permute.xlu2 %690  ;;  %vm666_vm4 = vweird.f32 %v852_v22  ;;  %v854_v40 = vpop.eup %853  ;;  %vm679_vm2 = vweird.f32 %v659_v41 }
 0x2db   :  { %v504_v28 = vsel %vm501_vm3, %v503_v24, %v499_v26  ;;  %711 = vmatpush.msra.mxu3 %v691_v27  ;;  %vm667_vm6 = vmor %vm665_vm5, %vm666_vm4  ;;  %v506_v42 = vmul.f32 %v854_v40, %v1094_v47  ;;  %vm511_vm10 = vweird.f32 %v854_v40  ;;  %vm684_vm4 = vcmp.eq.f32.partialorder %v683_v8, 8.507059e+37 }
 0x2dc   :  { %v662_v30 = vsub.f32 1.0, %v661_v60  ;;  %v519_v31 = vmul.f32 %v1077_v23, %v504_v28  ;;  %vm512_vm14 = vmor %vm510_vm13, %vm511_vm10  ;;  %vm412_vm5 = vcmask 130112  }
 0x2dd   :  { %v507_v43 = vsub.f32 1.0, %v506_v42 }
 0x2de   :  { %v663_v33 = vmul.f32 %v852_v22, %v662_v30  ;;  %791 = vmatmul.msk.f32.vlgmr.msrb.gmra.mxu3 %vm88_vm1, %v519_v31 }
 0x2df   :  { %v508_v48 = vmul.f32 %v854_v40, %v507_v43 }
 0x2e0   :  { %v664_v35 = vadd.f32 %v852_v22, %v663_v33 }
 0x2e1   :  { %v509_v53 = vadd.f32 %v854_v40, %v508_v48 }
 0x2e2   :  { %v668_v37 = vsel %vm667_vm6, %v852_v22, %v664_v35  ;;  %vm750_vm6 = vcmask 261312  }
 0x2e3   :  { %v673_v38 = vsel %vm670_vm7, %v672_v36, %v668_v37  ;;  %v513_v61 = vsel %vm512_vm14, %v854_v40, %v509_v53 }
 0x2e4   :  { %v688_v39 = vmul.f32 %v1081_v25, %v673_v38  ;;  %v518_v0 = vsel %vm515_vm15, %v517_v63, %v513_v61 }
 0x2e5   :  { %v520_v9 = vmul.f32 %v1062_v3, %v518_v0 }
 0x2e6   :  { %797 = vmatmul.msk.f32.vlgmr.msra.gmra.mxu3 %vm88_vm1, %v688_v39  ;;  %v321_v23 = vpop.xlane.xlu1 %320 }
 0x2e7   :  { %855 = vrcp.f32 %v321_v23  ;;  %v347_v49 = vand.u32 2147483648, %v321_v23  ;;  %v345_v25 = vand.u32 2147483647, %v321_v23  ;;  %vm341_vm9 = vweird.f32 %v321_v23 }
 0x2e8   :  { %857 = vrcp.f32 %v659_v41 }
 0x2e9   :  { %v348_v52 = vor.u32 1.1754944e-38, %v347_v49  ;;  %vm346_vm12 = vcmp.eq.f32.partialorder %v345_v25, 8.507059e+37 }
 0x2ed   :  { %v856_v6 = vpop.eup %855 }
 0x2ee   :  { %v337_v44 = vmul.f32 %v856_v6, %v321_v23  ;;  %v858_v45 = vpop.eup %857  ;;  %vm342_vm8 = vweird.f32 %v856_v6 }
 0x2ef   :  { %v675_v7 = vmul.f32 %v858_v45, %v659_v41  ;;  %vm343_vm11 = vmor %vm341_vm9, %vm342_vm8  ;;  %vm680_vm0 = vweird.f32 %v858_v45 }
 0x2f0   :  { %v338_v46 = vsub.f32 1.0, %v337_v44  ;;  %vm681_vm3 = vmor %vm679_vm2, %vm680_vm0 }
 0x2f1   :  { %v676_v55 = vsub.f32 1.0, %v675_v7 }
 0x2f2   :  { %v339_v50 = vmul.f32 %v856_v6, %v338_v46 }
 0x2f3   :  { %v677_v62 = vmul.f32 %v858_v45, %v676_v55 }
 0x2f4   :  { %v340_v51 = vadd.f32 %v856_v6, %v339_v50 }
 0x2f5   :  { %v678_v1 = vadd.f32 %v858_v45, %v677_v62 }
 0x2f6   :  { %v344_v54 = vsel %vm343_vm11, %v856_v6, %v340_v51 }
 0x2f7   :  { %v349_v57 = vsel %vm346_vm12, %v348_v52, %v344_v54  ;;  %v682_v47 = vsel %vm681_vm3, %v858_v45, %v678_v1 }
 0x2f8   :  { %v351_v59 = vmul.f32 %v1086_v29, %v349_v57  ;;  %v686_v29 = vor.u32 1.1754944e-38, %v685_v4 }
 0x2fa   :  { %786 = vmatmul.msk.f32.vlgmr.msra.gmra.mxu1 %vm88_vm1, %v351_v59  ;;  %v687_v10 = vsel %vm684_vm4, %v686_v29, %v682_v47 }
 0x2fb   :  { %v689_v11 = vmul.f32 %v1071_v16, %v687_v10 }
 0x2fe   :  { %v717_v2 = vpop.permute.xlu1 %716 }
 0x2ff   :  { %737 = vmatpush.msra.mxu1 %v717_v2 }
 0x302   :  { %792 = vmatmul.msk.f32.vlgmr.msrb.gmra.mxu1 %vm88_vm1, %v520_v9 }
 0x30a   :  { %798 = vmatmul.msk.f32.vlgmr.msra.gmra.mxu1 %vm88_vm1, %v689_v11 }
 0x315   :  { %v215_v12 = vpop.f32.mrf.mxu3 }
 0x316   :  { %244 = vst.msk [vmem:[#allocation7] sm:$0xff] %vm88_vm1, %v215_v12 }
 0x33a   :  { %v241_v13 = vpop.f32.mrf.mxu3 }
 0x33b   :  { %245 = vst.msk [vmem:[#allocation7 + $0x8] sm:$0xff] %vm88_vm1, %v241_v13  ;;  %vm581_vm1 = vcmask 195712  }
 0x342   :  { %v375_v14 = vpop.f32.mrf.mxu3 }
 0x343   :  { %406 = vrot.lane.b32.xlu2 %v375_v14, %s939_s18 }
 0x361   :  { %v544_v3 = vpop.f32.mrf.mxu3 }
 0x362   :  { %575 = vrot.lane.b32.xlu0 %v544_v3, %s952_s30 }
 0x369   :  { %v713_v5 = vpop.f32.mrf.mxu3 }
 0x377   :  { %v401_v15 = vpop.f32.mrf.mxu1 }
 0x378   :  { %408 = vrot.lane.b32.xlu1 %v401_v15, %s939_s18 }
 0x37f   :  { %v570_v17 = vpop.f32.mrf.mxu1 }
 0x380   :  { %577 = vrot.lane.b32.xlu2 %v570_v17, %s952_s30  ;;  %744 = vrot.lane.b32.xlu1 %v713_v5, %s953_s3 }
 0x387   :  { %v739_v16 = vpop.f32.mrf.mxu1 }
 0x388   :  { %746 = vrot.lane.b32.xlu2 %v739_v16, %s953_s3 }
 0x39d   :  { %v407_v18 = vpop.permute.xlu2 %406 }
 0x39e   :  { %413 = vst.msk [vmem:[#allocation7] sm:$0xff] %vm412_vm5, %v407_v18 }
 0x3d4   :  { %v576_v19 = vpop.permute.xlu0 %575 }
 0x3d5   :  { %582 = vst.msk [vmem:[#allocation7] sm:$0xff] %vm581_vm1, %v576_v19 }
 0x3da   :  { %v578_v20 = vpop.permute.xlu2 %577 }
 0x3e2   :  { %v747_v22 = vpop.permute.xlu2 %746 }
 0x3ea   :  { %v409_v21 = vpop.permute.xlu1 %408 }
 0x3eb   :  { %414 = vst.msk [vmem:[#allocation7 + $0x8] sm:$0xff] %vm412_vm5, %v409_v21 }
 0x3ec   :  { %583 = vst.msk [vmem:[#allocation7 + $0x8] sm:$0xff] %vm581_vm1, %v578_v20 }
 0x3ed   :  { %752 = vst.msk [vmem:[#allocation7 + $0x8] sm:$0xff] %vm750_vm6, %v747_v22 }
 0x3f2   :  { %v745_v24 = vpop.permute.xlu1 %744 }
 0x3f3   :  { %751 = vst.msk [vmem:[#allocation7] sm:$0xff] %vm750_vm6, %v745_v24 }
 0x3f4   :  { %765 = dma.vmem_to_hbm [thread:$0]  %s758_s5, 256, %s760_s8, [#allocation4], %s938_s17, %s938_s17, %s939_s18  }
 0x3f5   :  { %935 = dma.done.wait [#allocation4], 256  }
 0x3f6   :  { %936 = vsyncadd [#allocation4], 4294967040 }
 0x3f7   :  { %770 = vsyncpa [#allocation3], 1 }
 0x3f8   :  { %771 = vsyncpa [#allocation6], 1 }
 0x3f9   :  { %772 = vsyncpa [#allocation4], 1 }

</bundles_post_ra>
